<compile_context>
chip_gen: v5e
topology: v5e:2x2
jax: 0.10.0
libtpu: 0.0.40
codegen_flags: <defaults>
</compile_context>

<pallas_src>
import functools

import jax
import jax.numpy as jnp
import numpy as np
from jax.experimental import pallas as pl
from jax.experimental.pallas import tpu as pltpu


# ---------------------------------------------------------------------------
# Pallas kernel: one batch tile -> one lane-dense partial-sum block.
# ---------------------------------------------------------------------------
def _soft_ce_kernel(mix_ref, x_ref, la_ref, lb_ref, o_ref, *,
                    num_class, label_smooth, batch, tile_b):
    i = pl.program_id(0)

    x = x_ref[...].astype(jnp.float32)            # (TB, C) logits, cast in-kernel (free on VPU)
    la = la_ref[...]                              # (TB, 1) int32
    lb = lb_ref[...]                              # (TB, 1) int32
    mix = mix_ref[0]                              # scalar f32 from SMEM

    tb, c = x.shape

    # Numerically-stable logsumexp over the class (lane) axis.
    m = jnp.max(x, axis=-1, keepdims=True)
    lse = m + jnp.log(jnp.sum(jnp.exp(x - m), axis=-1, keepdims=True))     # (TB, 1)

    # x[b, label[b]] via iota-compare + select + lane reduction (VPU + XLU, no gather).
    cls = jax.lax.broadcasted_iota(jnp.int32, (tb, c), 1)
    xa = jnp.sum(jnp.where(cls == la, x, 0.0), axis=-1, keepdims=True)     # (TB, 1)
    xb = jnp.sum(jnp.where(cls == lb, x, 0.0), axis=-1, keepdims=True)     # (TB, 1)
    sum_x = jnp.sum(x, axis=-1, keepdims=True)                             # (TB, 1)

    picked = mix * xa + (1.0 - mix) * xb
    # per-row loss (already negated):
    row_loss = (lse
                - (1.0 - label_smooth) * picked
                - (label_smooth / num_class) * sum_x)                      # (TB, 1)

    # Mask rows beyond the true batch size (last tile may read OOB garbage).
    row = jax.lax.broadcasted_iota(jnp.int32, (tb, 1), 0) + i * tile_b
    row_loss = jnp.where(row < batch, row_loss, 0.0)

    # One unmasked, lane-dense (1, 1, 128) store per tile; mean finished outside.
    o_ref[...] = jnp.full((1, 1, 128), jnp.sum(row_loss), dtype=jnp.float32)


# ---------------------------------------------------------------------------
# Wrapper: tiling choice + pallas_call + final mean.
# ---------------------------------------------------------------------------
def _choose_tile_b(batch, num_class, itemsize, tile_b=None):
    if tile_b is None:
        # ~2 MiB per logits input buffer -> safe under v5e's 16 MiB scoped-VMEM default
        # even with double-buffering and f32 compute temporaries; capped at 512 rows.
        budget = 2 * 1024 * 1024
        tile_b = max(8, min(512, budget // max(1, num_class * itemsize)))
    if tile_b >= batch:
        return batch                       # single tile: block == full batch dim
    return max(8, (tile_b // 8) * 8)       # sublane (8) aligned when tiling


def soft_ce_loss_pallas(logits, label_a, label_b, mix_rate, *,
                        num_class, label_smooth=0.0, tile_b=None):
    B, C = logits.shape
    assert C == num_class, "logit class dim must match num_class"

    tb = _choose_tile_b(B, C, jnp.dtype(logits.dtype).itemsize, tile_b)
    num_tiles = pl.cdiv(B, tb)

    la = label_a.astype(jnp.int32).reshape(B, 1)
    lb = label_b.astype(jnp.int32).reshape(B, 1)
    mix = jnp.asarray(mix_rate, dtype=jnp.float32).reshape(1)

    kernel = functools.partial(
        _soft_ce_kernel,
        num_class=C,
        label_smooth=float(label_smooth),
        batch=B,
        tile_b=tb,
    )

    partials = pl.pallas_call(
        kernel,
        out_shape=jax.ShapeDtypeStruct((num_tiles, 1, 128), jnp.float32),
        grid_spec=pltpu.PrefetchScalarGridSpec(
            num_scalar_prefetch=0,
            grid=(num_tiles,),
            in_specs=[
                pl.BlockSpec(memory_space=pltpu.MemorySpace.SMEM),  # mix_rate scalar
                pl.BlockSpec((tb, C), lambda i: (i, 0)),            # logits batch tile
                pl.BlockSpec((tb, 1), lambda i: (i, 0)),            # label_a tile
                pl.BlockSpec((tb, 1), lambda i: (i, 0)),            # label_b tile
            ],
            out_specs=pl.BlockSpec((1, 1, 128), lambda i: (i, 0, 0)),
        ),
        compiler_params=pltpu.CompilerParams(
            dimension_semantics=("parallel",)),
    )(mix, logits, la, lb)

    # Final mean over the TRUE batch size (padded/masked rows contributed 0).
    return jnp.sum(partials[:, 0, 0]) / B


class MyCrossEntropyLoss:
    """JAX/Pallas port of the PyTorch MyCrossEntropyLoss module (forward pass)."""

    def __init__(self, num_class, label_smooth=0.0):
        self.num_class = num_class
        self.label_smooth = label_smooth

    def __call__(self, input, label, label_b=None, mix_rate=None, tile_b=None):
        if label_b is None or mix_rate is None:
            label_b = label       # plain path == mixup with mix_rate = 1.0
            mix_rate = 1.0
        return soft_ce_loss_pallas(
            input, label, label_b, mix_rate,
            num_class=self.num_class, label_smooth=self.label_smooth, tile_b=tile_b)


# ---------------------------------------------------------------------------
# Pure-JAX reference for correctness checking.
# ---------------------------------------------------------------------------
def _ref_soft_target(label, num_class, label_smooth):
    oh = jax.nn.one_hot(label, num_class, dtype=jnp.float32)
    return oh * (1.0 - label_smooth) + label_smooth / num_class


def _ref_loss(logits, soft_target):
    logp = jax.nn.log_softmax(logits.astype(jnp.float32), axis=-1)
    return -jnp.mean(jnp.sum(logp * soft_target, axis=-1))


if __name__ == "__main__":
    key = jax.random.PRNGKey(0)
    C = 100                    # module default num_class=100
    label_smooth = 0.1
    loss_fn = MyCrossEntropyLoss(num_class=C, label_smooth=label_smooth)

    # --- case 1: plain (smoothed one-hot) targets, single tile ---
    B = 8
    k1, k2, k3 = jax.random.split(key, 3)
    logits = jax.random.normal(k1, (B, C), dtype=jnp.float32)
    label = jax.random.randint(k2, (B,), 0, C, dtype=jnp.int32)
    label_b = jax.random.randint(k3, (B,), 0, C, dtype=jnp.int32)

    loss_plain = loss_fn(logits, label)
    jax.block_until_ready(loss_plain)
    ref_plain = _ref_loss(logits, _ref_soft_target(label, C, label_smooth))
    np.testing.assert_allclose(np.asarray(loss_plain), np.asarray(ref_plain),
                               rtol=1e-5, atol=1e-5)

    # --- case 2: mixup targets ---
    mix_rate = 0.3
    loss_mix = loss_fn(logits, label, label_b=label_b, mix_rate=mix_rate)
    jax.block_until_ready(loss_mix)
    ref_mix = _ref_loss(
        logits,
        mix_rate * _ref_soft_target(label, C, label_smooth)
        + (1.0 - mix_rate) * _ref_soft_target(label_b, C, label_smooth))
    np.testing.assert_allclose(np.asarray(loss_mix), np.asarray(ref_mix),
                               rtol=1e-5, atol=1e-5)

    # --- case 3: multi-tile grid with a partial (masked) last tile ---
    B3 = 20
    k4, k5, k6 = jax.random.split(jax.random.PRNGKey(1), 3)
    logits3 = jax.random.normal(k4, (B3, C), dtype=jnp.float32)
    label3 = jax.random.randint(k5, (B3,), 0, C, dtype=jnp.int32)
    label3b = jax.random.randint(k6, (B3,), 0, C, dtype=jnp.int32)
    loss3 = loss_fn(logits3, label3, label_b=label3b, mix_rate=0.7, tile_b=8)
    jax.block_until_ready(loss3)
    ref3 = _ref_loss(
        logits3,
        0.7 * _ref_soft_target(label3, C, label_smooth)
        + 0.3 * _ref_soft_target(label3b, C, label_smooth))
    np.testing.assert_allclose(np.asarray(loss3), np.asarray(ref3),
                               rtol=1e-5, atol=1e-5)

    print("KERNEL_OK")
</pallas_src>

<mosaic_0001>
module attributes {stable_mosaic.version = 11 : i64} {
  func.func @_soft_ce_kernel(%arg0: i32, %arg1: memref<1xf32, #tpu.memory_space<smem>>, %arg2: memref<8x100xf32, #tpu.memory_space<vmem>>, %arg3: memref<8x1xi32, #tpu.memory_space<vmem>>, %arg4: memref<8x1xi32, #tpu.memory_space<vmem>>, %arg5: memref<1x1x128xf32, #tpu.memory_space<vmem>>) attributes {dimension_semantics = [#tpu.dimension_semantics<parallel>], iteration_bounds = array<i64: 1>, scalar_prefetch = 0 : i64, scratch_operands = 0 : i64, tpu.core_type = #tpu.core_type<tc>, window_params = [{transform_indices = @transform_0, window_bounds = array<i64: 1>}, {transform_indices = @transform_1, window_bounds = array<i64: 8, 100>}, {transform_indices = @transform_2, window_bounds = array<i64: 8, 1>}, {transform_indices = @transform_3, window_bounds = array<i64: 8, 1>}, {transform_indices = @transform_4, window_bounds = array<i64: 1, 1, 128>}]} {
    %c0 = arith.constant 0 : index
    %c0_0 = arith.constant 0 : index
    %0 = vector.load %arg2[%c0, %c0_0] : memref<8x100xf32, #tpu.memory_space<vmem>>, vector<8x100xf32>
    %c0_1 = arith.constant 0 : index
    %c0_2 = arith.constant 0 : index
    %1 = vector.load %arg3[%c0_1, %c0_2] : memref<8x1xi32, #tpu.memory_space<vmem>>, vector<8x1xi32>
    %c0_3 = arith.constant 0 : index
    %c0_4 = arith.constant 0 : index
    %2 = vector.load %arg4[%c0_3, %c0_4] : memref<8x1xi32, #tpu.memory_space<vmem>>, vector<8x1xi32>
    %c0_5 = arith.constant 0 : index
    %3 = memref.load %arg1[%c0_5] : memref<1xf32, #tpu.memory_space<smem>>
    %cst = arith.constant dense<0xFF800000> : vector<8xf32>
    %4 = vector.multi_reduction <maximumf>, %0, %cst [1] : vector<8x100xf32> to vector<8xf32>
    %5 = vector.shape_cast %4 : vector<8xf32> to vector<8x1xf32>
    %6 = vector.broadcast %5 : vector<8x1xf32> to vector<8x100xf32>
    %7 = arith.subf %0, %6 : vector<8x100xf32>
    %8 = math.exp %7 : vector<8x100xf32>
    %cst_6 = arith.constant dense<0.000000e+00> : vector<8xf32>
    %9 = vector.multi_reduction <add>, %8, %cst_6 [1] : vector<8x100xf32> to vector<8xf32>
    %10 = vector.shape_cast %9 : vector<8xf32> to vector<8x1xf32>
    %11 = math.log %10 : vector<8x1xf32>
    %12 = arith.addf %5, %11 : vector<8x1xf32>
    %13 = tpu.iota {dimensions = array<i32: 1>} : vector<8x100xi32>
    %14 = vector.broadcast %1 : vector<8x1xi32> to vector<8x100xi32>
    %15 = arith.cmpi eq, %13, %14 : vector<8x100xi32>
    %cst_7 = arith.constant 0.000000e+00 : f32
    %16 = vector.broadcast %cst_7 : f32 to vector<8x100xf32>
    %17 = arith.select %15, %0, %16 : vector<8x100xi1>, vector<8x100xf32>
    %cst_8 = arith.constant dense<0.000000e+00> : vector<8xf32>
    %18 = vector.multi_reduction <add>, %17, %cst_8 [1] : vector<8x100xf32> to vector<8xf32>
    %19 = vector.shape_cast %18 : vector<8xf32> to vector<8x1xf32>
    %20 = vector.broadcast %2 : vector<8x1xi32> to vector<8x100xi32>
    %21 = arith.cmpi eq, %13, %20 : vector<8x100xi32>
    %cst_9 = arith.constant 0.000000e+00 : f32
    %22 = vector.broadcast %cst_9 : f32 to vector<8x100xf32>
    %23 = arith.select %21, %0, %22 : vector<8x100xi1>, vector<8x100xf32>
    %cst_10 = arith.constant dense<0.000000e+00> : vector<8xf32>
    %24 = vector.multi_reduction <add>, %23, %cst_10 [1] : vector<8x100xf32> to vector<8xf32>
    %25 = vector.shape_cast %24 : vector<8xf32> to vector<8x1xf32>
    %cst_11 = arith.constant dense<0.000000e+00> : vector<8xf32>
    %26 = vector.multi_reduction <add>, %0, %cst_11 [1] : vector<8x100xf32> to vector<8xf32>
    %27 = vector.shape_cast %26 : vector<8xf32> to vector<8x1xf32>
    %28 = vector.broadcast %3 : f32 to vector<8x1xf32>
    %29 = arith.mulf %28, %19 : vector<8x1xf32>
    %cst_12 = arith.constant 1.000000e+00 : f32
    %30 = arith.subf %cst_12, %3 : f32
    %31 = vector.broadcast %30 : f32 to vector<8x1xf32>
    %32 = arith.mulf %31, %25 : vector<8x1xf32>
    %33 = arith.addf %29, %32 : vector<8x1xf32>
    %cst_13 = arith.constant 0.899999976 : f32
    %34 = vector.broadcast %cst_13 : f32 to vector<8x1xf32>
    %35 = arith.mulf %34, %33 : vector<8x1xf32>
    %36 = arith.subf %12, %35 : vector<8x1xf32>
    %cst_14 = arith.constant 1.000000e-03 : f32
    %37 = vector.broadcast %cst_14 : f32 to vector<8x1xf32>
    %38 = arith.mulf %37, %27 : vector<8x1xf32>
    %39 = arith.subf %36, %38 : vector<8x1xf32>
    %40 = tpu.iota {dimensions = array<i32: 0>} : vector<8x1xi32>
    %c8_i32 = arith.constant 8 : i32
    %41 = arith.muli %arg0, %c8_i32 : i32
    %42 = vector.broadcast %41 : i32 to vector<8x1xi32>
    %43 = arith.addi %40, %42 : vector<8x1xi32>
    %c8_i32_15 = arith.constant 8 : i32
    %44 = vector.broadcast %c8_i32_15 : i32 to vector<8x1xi32>
    %45 = arith.cmpi slt, %43, %44 : vector<8x1xi32>
    %cst_16 = arith.constant 0.000000e+00 : f32
    %46 = vector.broadcast %cst_16 : f32 to vector<8x1xf32>
    %47 = arith.select %45, %39, %46 : vector<8x1xi1>, vector<8x1xf32>
    %48 = vector.shape_cast %47 : vector<8x1xf32> to vector<1x8x1xf32>
    %cst_17 = arith.constant dense<0.000000e+00> : vector<1xf32>
    %49 = vector.multi_reduction <add>, %48, %cst_17 [1, 2] : vector<1x8x1xf32> to vector<1xf32>
    %50 = vector.shape_cast %49 : vector<1xf32> to vector<1x1x1xf32>
    %51 = vector.extract %50[0, 0, 0] : f32 from vector<1x1x1xf32>
    %52 = vector.broadcast %51 : f32 to vector<1x1x128xf32>
    %c0_18 = arith.constant 0 : index
    %c0_19 = arith.constant 0 : index
    %c0_20 = arith.constant 0 : index
    %53 = vector.load %arg5[%c0_18, %c0_19, %c0_20] : memref<1x1x128xf32, #tpu.memory_space<vmem>>, vector<1x1x128xf32>
    tpu.vector_store %arg5[%c0_18, %c0_19, %c0_20], %52 {strides = array<i32>} : memref<1x1x128xf32, #tpu.memory_space<vmem>>, vector<1x1x128xf32>,
    return
  }
  func.func @transform_0(%arg0: i32) -> i32 {
    %c0_i32 = arith.constant 0 : i32
    %c0_i32_0 = arith.constant 0 : i32
    return %c0_i32 : i32
  }
  func.func @transform_1(%arg0: i32) -> (i32, i32) {
    %c0_i32 = arith.constant 0 : i32
    %c0_i32_0 = arith.constant 0 : i32
    return %arg0, %c0_i32 : i32, i32
  }
  func.func @transform_2(%arg0: i32) -> (i32, i32) {
    %c0_i32 = arith.constant 0 : i32
    %c0_i32_0 = arith.constant 0 : i32
    return %arg0, %c0_i32 : i32, i32
  }
  func.func @transform_3(%arg0: i32) -> (i32, i32) {
    %c0_i32 = arith.constant 0 : i32
    %c0_i32_0 = arith.constant 0 : i32
    return %arg0, %c0_i32 : i32, i32
  }
  func.func @transform_4(%arg0: i32) -> (i32, i32, i32) {
    %c0_i32 = arith.constant 0 : i32
    %c0_i32_0 = arith.constant 0 : i32
    %c0_i32_1 = arith.constant 0 : i32
    return %arg0, %c0_i32, %c0_i32_0 : i32, i32, i32
  }
}

</mosaic_0001>

<bundles_post_ra>
// kernel: tpu_custom_call.1
= control target key start
LH: loop header
LB: loop body
LE: loop exit
PB: predicated region body
PF: predicated region fallthrough
CT: control target
= control target key end

     0   :  { %vm23_vm0 = vcmask 818176   ;;  %v139_v3 = vmov 0   ;;  %s189_s0 = inlined_call_operand.<no memory space> [shape: f32[1], index: 0, kind: input, shape index: {}]   ;;  %s190_s1 = inlined_call_operand.vmem [shape: f32[8,100], index: 1, kind: input, shape index: {}]   ;;  %s191_s2 = inlined_call_operand.vmem [shape: s32[8,1], index: 2, kind: input, shape index: {}]   ;;  %s192_s3 = inlined_call_operand.vmem [shape: s32[8,1], index: 3, kind: input, shape index: {}]   ;;  %s193_s4 = inlined_call_operand.hbm [shape: f32[1,1,128], index: 4, kind: output, shape index: {}]  }
   0x1   :  { %v19_v0 = vld [vmem:[%s190_s1] sm:$0xff]  ;;  %107 = vset.pattern.permute.xlu0 %v139_v3  ;;  %108 = vset.pattern.permute.xlu1 %v139_v3 }
   0x2   :  { %v21_v1 = vld [vmem:[%s192_s3] sm:$0xff]  ;;  %v24_v2 = vsel %vm23_vm0, %v19_v0, -inf }
   0x3   :  { %10 = vsyncpa [#allocation4], 0  ;;  %25 = vmax.xlane.f32.xlu0 %v24_v2  ;;  %47 = vperm.xlu1 %108, %v21_v1   ;;  %v20_v4 = vld [vmem:[%s191_s2] sm:$0xff]  ;;  %v36_v10 = vlaneseq  ;;  %v54_v18 = vsel %vm23_vm0, %v19_v0, 0.0  ;;  %s59_s3 = ssub.f32 1.0, %s189_s0  ;;  %v57_v21 = vstv %s189_s0  ;;  %vm74_vm3 = vcmask 7168  }
   0x4   :  { %s140_s0 = smov [#allocation3]   ;;  %s94_s26 = sshll.u32 %s193_s4, 4  ;;  %s95_s26 = int_to_ptr.hbm [resolvable:$true] %s94_s26 }
   0x5   :  { %v37_v11 = vand.u32 127, %v36_v10  ;;  %v60_v22 = vstv %s59_s3  ;;  %s92_s23 = sshll.u32 %s140_s0, 4  ;;  %s93_s23 = int_to_ptr.vmem [resolvable:$true] %s92_s23 }
  0x17   :  { %39 = vperm.xlu0 %107, %v20_v4  }
  0x75   :  { %v48_v13 = vpop.permute.xlu1 %47 }
  0x76   :  { %v26_v5 = vpop.xlane.xlu0 %25  ;;  %vm49_vm2 = vcmp.eq.s32.totalorder %v37_v11, %v48_v13 }
  0x77   :  { %v27_v6 = vsub.f32 %v19_v0, %v26_v5  ;;  %v50_v16 = vsel %vm49_vm2, %v19_v0, 0.0 }
  0x78   :  { %v51_v17 = vsel %vm23_vm0, %v50_v16, 0.0 }
  0x79   :  { %v28_v7 = vmul.f32 1.442695, %v27_v6 }
  0x7b   :  { %109 = vpow2.f32 %v28_v7 }
  0x81   :  { %v110_v8 = vpop.eup %109 }
  0x82   :  { %v30_v9 = vsel %vm23_vm0, %v110_v8, 0.0 }
  0x83   :  { %31 = vadd.xlane.f32.xlu1 %v30_v9 }
  0x89   :  { %v40_v12 = vpop.permute.xlu0 %39 }
  0x8a   :  { %vm41_vm1 = vcmp.eq.s32.totalorder %v37_v11, %v40_v12 }
  0x8b   :  { %v42_v14 = vsel %vm41_vm1, %v19_v0, 0.0 }
  0x8c   :  { %v43_v15 = vsel %vm23_vm0, %v42_v14, 0.0 }
  0x8d   :  { %44 = vadd.xlane.f32.xlu2 %v43_v15 }
  0x95   :  { %52 = vadd.xlane.f32.xlu2 %v51_v17 }
  0x9d   :  { %55 = vadd.xlane.f32.xlu2 %v54_v18 }
  0xf6   :  { %v32_v19 = vpop.xlane.xlu1 %31 }
  0xf7   :  { %111 = vlog2.f32 %v32_v19 }
  0xfd   :  { %v112_v23 = vpop.eup %111 }
  0xfe   :  { %v34_v27 = vmul.f32 0.6931472, %v112_v23 }
 0x100   :  { %v45_v20 = vpop.xlane.xlu2 %44  ;;  %v35_v30 = vadd.f32 %v34_v27, %v26_v5 }
 0x101   :  { %v58_v25 = vmul.f32 %v57_v21, %v45_v20 }
 0x108   :  { %v53_v24 = vpop.xlane.xlu2 %52 }
 0x109   :  { %v61_v26 = vmul.f32 %v60_v22, %v53_v24 }
 0x10b   :  { %v62_v28 = vadd.f32 %v61_v26, %v58_v25 }
 0x10d   :  { %v63_v29 = vmul.f32 0.9, %v62_v28 }
 0x10f   :  { %v64_v33 = vsub.f32 %v35_v30, %v63_v29 }
 0x110   :  { %v56_v31 = vpop.xlane.xlu2 %55 }
 0x111   :  { %v65_v32 = vmul.f32 0.001, %v56_v31 }
 0x113   :  { %v66_v34 = vsub.f32 %v64_v33, %v65_v32 }
 0x115   :  { %v75_v35 = vsel %vm74_vm3, %v66_v34, 0.0 }
 0x116   :  { %76 = vadd.xlane.f32.xlu2 %v75_v35 }
 0x189   :  { %v77_v36 = vpop.xlane.xlu2 %76 }
 0x18a   :  { %v78_v37 = vrot.slane %v77_v36, 4 }
 0x18c   :  { %v79_v38 = vadd.f32 %v78_v37, %v77_v36 }
 0x18e   :  { %v80_v39 = vrot.slane %v79_v38, 2 }
 0x190   :  { %v81_v40 = vadd.f32 %v80_v39, %v79_v38 }
 0x192   :  { %v82_v41 = vrot.slane %v81_v40, 1 }
 0x194   :  { %v83_v42 = vadd.f32 %v82_v41, %v81_v40 }
 0x196   :  { %103 = vpush %v83_v42 }
 0x1c7   :  { %s104_s27 = spop %103 }
 0x1c8   :  { %v85_v43 = vstv %s104_s27 }
 0x1c9   :  { %86 = vst [vmem:[#allocation3] sm:$0x1] %v85_v43 }
 0x1ca   :  { %97 = dma.vmem_to_hbm [thread:$0]  %s93_s23, 16, %s95_s26, [#allocation4]  }
 0x1cb   :  { %137 = dma.done.wait [#allocation4], 16  }
 0x1cc   :  { %138 = vsyncadd [#allocation4], 4294967280 }
 0x1cd   :  { %102 = vsyncpa [#allocation4], 1 }

</bundles_post_ra>
